<compile_context>
chip_gen: v7x
topology: tpu7x:2x2x1
jax: 0.10.0
libtpu: 0.0.40
codegen_flags: <defaults>
</compile_context>

<pallas_src>
import math
import numpy as np
import jax
import jax.numpy as jnp
from jax.experimental import pallas as pl
from jax.experimental.pallas import tpu as pltpu


def _channel_attn(w_ref, m):
    """m: (C, 1) per-channel means.  Returns sigmoid(conv1d_k3(m)), shape (C, 1).

    Conv1d(1, 1, k=3, pad=1, no bias) across channels, as three shifted adds
    (zero padding at the channel boundaries) — no (C, C) band matmul.
    """
    C = m.shape[0]
    zero = jnp.zeros((1, 1), m.dtype)
    m_prev = jnp.concatenate([zero, m[:C - 1, :]], axis=0)   # m[c-1], 0 at c=0
    m_next = jnp.concatenate([m[1:, :], zero], axis=0)       # m[c+1], 0 at c=C-1
    z = w_ref[0] * m_prev + w_ref[1] * m + w_ref[2] * m_next
    return 1.0 / (1.0 + jnp.exp(-z))


def eca_kernel_s1(w_ref, x_ref, o_ref):
    """stride == 1: x block is (C, H*W), lane-dense."""
    x = x_ref[...]                                            # (C, HW)
    m = jnp.sum(x, axis=1, keepdims=True) * (1.0 / x.shape[1])  # (C, 1)
    s = _channel_attn(w_ref, m)                               # (C, 1)
    o_ref[...] = (x * s).astype(o_ref.dtype)


def eca_kernel_s2(w_ref, x_ref, aw_ref, inv_ref, o_ref):
    """stride == 2: x block is (C, H, W); fused scale + 3x3/s2 avg-pool."""
    C, H, W = x_ref.shape
    Ho, Wo = inv_ref.shape

    # --- channel attention scale (computed from the raw input means) ---
    x = x_ref[...]                                            # (C, H, W)
    m = jnp.sum(jnp.sum(x, axis=2), axis=1, keepdims=True) * (1.0 / (H * W))
    s = _channel_attn(w_ref, m)                               # (C, 1)

    # --- avg_pool(3, stride=2, pad=1, count_include_pad=False) of x ---
    # (scaling commutes with the pooling, so it is applied on the pooled sums)
    # H window + H decimation via strided row reads + zero-padded shifts.
    ctr = x_ref[:, pl.ds(0, Ho, stride=2), :]                 # x[:, 2i,   :]  (C, Ho, W)
    n_odd = H // 2                                            # rows 2i+1 that exist
    odd = x_ref[:, pl.ds(1, n_odd, stride=2), :]              # x[:, 2i+1, :]  (C, n_odd, W)
    if n_odd < Ho:   # odd H: last window has no row below -> zero contribution
        odd = jnp.concatenate(
            [odd, jnp.zeros((C, Ho - n_odd, W), jnp.float32)], axis=1)
    up = jnp.concatenate(                                     # x[:, 2i-1, :], 0 at i=0
        [jnp.zeros((C, 1, W), jnp.float32), odd[:, :Ho - 1, :]], axis=1)
    rh = ctr + odd + up                                       # (C, Ho, W) row-window sums

    # W window + W decimation as a single lane-contraction MXU dot with the
    # hoisted 0/1 window-membership matrix aw (W, Wo).
    t = jnp.dot(rh.reshape(C * Ho, W), aw_ref[...],
                preferred_element_type=jnp.float32).reshape(C, Ho, Wo)

    # scale by sigmoid gate and the precomputed reciprocal valid-count map.
    o_ref[...] = (t * s[:, :, None] * inv_ref[...]).astype(o_ref.dtype)


def _vmem_limit(n_in_elems, n_out_elems, n_const_elems):
    need = 2 * 4 * (n_in_elems + n_out_elems) + 4 * n_const_elems + (2 << 20)
    return int(min(64 * 1024 * 1024, max(32 * 1024 * 1024, need)))


def eca_forward(x, conv_w, stride):
    """x: (B, C, H, W) f32, conv_w: (1, 1, 3) f32, stride in {1, 2}."""
    B, C, H, W = x.shape
    w = conv_w.reshape(3).astype(jnp.float32)

    if stride != 2:
        HW = H * W
        x_flat = x.reshape(B, C, HW)                          # lane-dense layout
        out = pl.pallas_call(
            eca_kernel_s1,
            out_shape=jax.ShapeDtypeStruct((B, C, HW), x.dtype),
            grid_spec=pltpu.PrefetchScalarGridSpec(
                num_scalar_prefetch=0,
                grid=(B,),
                in_specs=[
                    pl.BlockSpec(memory_space=pltpu.MemorySpace.SMEM),   # conv weights
                    pl.BlockSpec((None, C, HW), lambda b: (b, 0, 0)),    # x slab
                ],
                out_specs=pl.BlockSpec((None, C, HW), lambda b: (b, 0, 0)),
            ),
            compiler_params=pltpu.CompilerParams(
                dimension_semantics=("parallel",),
                vmem_limit_bytes=_vmem_limit(C * HW, C * HW, 0)),
        )(w, x_flat)
        return out.reshape(B, C, H, W)

    # stride == 2
    Ho = (H - 1) // 2 + 1
    Wo = (W - 1) // 2 + 1

    # Batch-invariant constants, hoisted out of the grid loop.
    wi = np.arange(W)[:, None]
    ji = np.arange(Wo)[None, :]
    a_w = jnp.asarray((np.abs(wi - 2 * ji) <= 1).astype(np.float32))     # (W, Wo)

    oi = np.arange(Ho)[:, None]
    oj = np.arange(Wo)[None, :]
    cnt_h = np.minimum(2 * oi + 1, H - 1) - np.maximum(2 * oi - 1, 0) + 1
    cnt_w = np.minimum(2 * oj + 1, W - 1) - np.maximum(2 * oj - 1, 0) + 1
    inv_cnt = jnp.asarray((1.0 / (cnt_h * cnt_w)).astype(np.float32))    # (Ho, Wo)

    return pl.pallas_call(
        eca_kernel_s2,
        out_shape=jax.ShapeDtypeStruct((B, C, Ho, Wo), x.dtype),
        grid_spec=pltpu.PrefetchScalarGridSpec(
            num_scalar_prefetch=0,
            grid=(B,),
            in_specs=[
                pl.BlockSpec(memory_space=pltpu.MemorySpace.SMEM),         # conv weights
                pl.BlockSpec((None, C, H, W), lambda b: (b, 0, 0, 0)),     # x slab
                pl.BlockSpec((W, Wo), lambda b: (0, 0)),                   # W-window matrix
                pl.BlockSpec((Ho, Wo), lambda b: (0, 0)),                  # 1/valid-count
            ],
            out_specs=pl.BlockSpec((None, C, Ho, Wo), lambda b: (b, 0, 0, 0)),
        ),
        compiler_params=pltpu.CompilerParams(
            dimension_semantics=("parallel",),
            vmem_limit_bytes=_vmem_limit(C * H * W, C * Ho * Wo,
                                         W * Wo + Ho * Wo)),
    )(w, x, a_w, inv_cnt)
    # TODO(synk): for v7x-sized inputs, tile the channel dim (two-pass: gate then
    # scale+pool) instead of keeping a full (C, H, W) slab per grid step.


def ref_eca(x, w, stride):
    """NumPy reference matching the PyTorch module semantics."""
    B, C, H, W = x.shape
    m = x.mean(axis=(2, 3))                                   # (B, C)
    mp = np.pad(m, ((0, 0), (1, 1)))
    z = w[0] * mp[:, :C] + w[1] * mp[:, 1:C + 1] + w[2] * mp[:, 2:C + 2]
    s = 1.0 / (1.0 + np.exp(-z))
    y = x * s[:, :, None, None]
    if stride != 2:
        return y.astype(x.dtype)
    Ho = (H - 1) // 2 + 1
    Wo = (W - 1) // 2 + 1
    out = np.zeros((B, C, Ho, Wo), dtype=np.float32)
    for i in range(Ho):
        for j in range(Wo):
            h0, h1 = max(0, 2 * i - 1), min(H, 2 * i + 2)
            w0_, w1_ = max(0, 2 * j - 1), min(W, 2 * j + 2)
            out[:, :, i, j] = y[:, :, h0:h1, w0_:w1_].mean(axis=(2, 3))
    return out.astype(x.dtype)


if __name__ == "__main__":
    key = jax.random.PRNGKey(0)
    k_x, k_w = jax.random.split(key)

    B, C, H, W = 2, 4, 16, 16
    x = jax.random.normal(k_x, (B, C, H, W), dtype=jnp.float32)

    # Deterministic Conv1d(1, 1, 3, bias=False) weight (PyTorch-style bound).
    bound = 1.0 / math.sqrt(3.0)
    conv_w = jax.random.uniform(k_w, (1, 1, 3), dtype=jnp.float32,
                                minval=-bound, maxval=bound)

    x_np = np.asarray(x)
    w_np = np.asarray(conv_w).reshape(3)

    for stride in (1, 2):
        out = jax.block_until_ready(eca_forward(x, conv_w, stride))
        ref = ref_eca(x_np, w_np, stride)
        assert out.shape == ref.shape, (out.shape, ref.shape)
        np.testing.assert_allclose(np.asarray(out), ref, rtol=5e-5, atol=5e-5)

    print("KERNEL_OK")
</pallas_src>

<mosaic_0001>
module attributes {stable_mosaic.version = 11 : i64} {
  func.func @eca_kernel_s1(%arg0: i32, %arg1: memref<3xf32, #tpu.memory_space<smem>>, %arg2: memref<1x4x256xf32, #tpu.memory_space<vmem>>, %arg3: memref<1x4x256xf32, #tpu.memory_space<vmem>>) attributes {dimension_semantics = [#tpu.dimension_semantics<parallel>], iteration_bounds = array<i64: 2>, scalar_prefetch = 0 : i64, scratch_operands = 0 : i64, tpu.core_type = #tpu.core_type<tc>, window_params = [{transform_indices = @transform_0, window_bounds = array<i64: 3>}, {transform_indices = @transform_1, window_bounds = array<i64: 1, 4, 256>}, {transform_indices = @transform_2, window_bounds = array<i64: 1, 4, 256>}]} {
    %c0 = arith.constant 0 : index
    %c0_0 = arith.constant 0 : index
    %c0_1 = arith.constant 0 : index
    %0 = vector.load %arg2[%c0, %c0_0, %c0_1] : memref<1x4x256xf32, #tpu.memory_space<vmem>>, vector<1x4x256xf32>
    %1 = vector.shape_cast %0 : vector<1x4x256xf32> to vector<4x256xf32>
    %cst = arith.constant dense<0.000000e+00> : vector<4xf32>
    %2 = vector.multi_reduction <add>, %1, %cst [1] : vector<4x256xf32> to vector<4xf32>
    %3 = vector.shape_cast %2 : vector<4xf32> to vector<4x1xf32>
    %cst_2 = arith.constant 3.906250e-03 : f32
    %4 = vector.broadcast %cst_2 : f32 to vector<4x1xf32>
    %5 = arith.mulf %3, %4 : vector<4x1xf32>
    %cst_3 = arith.constant 0.000000e+00 : f32
    %6 = vector.broadcast %cst_3 : f32 to vector<1x1xf32>
    %7 = vector.extract_strided_slice %5 {offsets = [0, 0], sizes = [3, 1], strides = [1, 1]} : vector<4x1xf32> to vector<3x1xf32>
    %8 = tpu.concatenate %6, %7 in 0 : vector<1x1xf32>, vector<3x1xf32> -> vector<4x1xf32>
    %9 = vector.extract_strided_slice %5 {offsets = [1, 0], sizes = [3, 1], strides = [1, 1]} : vector<4x1xf32> to vector<3x1xf32>
    %10 = tpu.concatenate %9, %6 in 0 : vector<3x1xf32>, vector<1x1xf32> -> vector<4x1xf32>
    %c0_4 = arith.constant 0 : index
    %11 = memref.load %arg1[%c0_4] : memref<3xf32, #tpu.memory_space<smem>>
    %12 = vector.broadcast %11 : f32 to vector<4x1xf32>
    %13 = arith.mulf %12, %8 : vector<4x1xf32>
    %c1 = arith.constant 1 : index
    %14 = memref.load %arg1[%c1] : memref<3xf32, #tpu.memory_space<smem>>
    %15 = vector.broadcast %14 : f32 to vector<4x1xf32>
    %16 = arith.mulf %15, %5 : vector<4x1xf32>
    %17 = arith.addf %13, %16 : vector<4x1xf32>
    %c2 = arith.constant 2 : index
    %18 = memref.load %arg1[%c2] : memref<3xf32, #tpu.memory_space<smem>>
    %19 = vector.broadcast %18 : f32 to vector<4x1xf32>
    %20 = arith.mulf %19, %10 : vector<4x1xf32>
    %21 = arith.addf %17, %20 : vector<4x1xf32>
    %cst_5 = arith.constant 0.000000e+00 : f32
    %22 = vector.broadcast %cst_5 : f32 to vector<4x1xf32>
    %23 = arith.subf %22, %21 : vector<4x1xf32>
    %24 = math.exp %23 : vector<4x1xf32>
    %cst_6 = arith.constant 1.000000e+00 : f32
    %25 = vector.broadcast %cst_6 : f32 to vector<4x1xf32>
    %26 = arith.addf %25, %24 : vector<4x1xf32>
    %cst_7 = arith.constant 1.000000e+00 : f32
    %27 = vector.broadcast %cst_7 : f32 to vector<4x1xf32>
    %28 = arith.divf %27, %26 : vector<4x1xf32>
    %29 = vector.broadcast %28 : vector<4x1xf32> to vector<4x256xf32>
    %30 = arith.mulf %1, %29 : vector<4x256xf32>
    %c0_8 = arith.constant 0 : index
    %c0_9 = arith.constant 0 : index
    %c0_10 = arith.constant 0 : index
    %31 = vector.load %arg3[%c0_8, %c0_9, %c0_10] : memref<1x4x256xf32, #tpu.memory_space<vmem>>, vector<1x4x256xf32>
    %32 = vector.shape_cast %31 : vector<1x4x256xf32> to vector<4x256xf32>
    %33 = vector.shape_cast %30 : vector<4x256xf32> to vector<1x4x256xf32>
    tpu.vector_store %arg3[%c0_8, %c0_9, %c0_10], %33 {strides = array<i32>} : memref<1x4x256xf32, #tpu.memory_space<vmem>>, vector<1x4x256xf32>,
    return
  }
  func.func @transform_0(%arg0: i32) -> i32 {
    %c0_i32 = arith.constant 0 : i32
    %c0_i32_0 = arith.constant 0 : i32
    return %c0_i32 : i32
  }
  func.func @transform_1(%arg0: i32) -> (i32, i32, i32) {
    %c0_i32 = arith.constant 0 : i32
    %c0_i32_0 = arith.constant 0 : i32
    %c0_i32_1 = arith.constant 0 : i32
    return %arg0, %c0_i32, %c0_i32_0 : i32, i32, i32
  }
  func.func @transform_2(%arg0: i32) -> (i32, i32, i32) {
    %c0_i32 = arith.constant 0 : i32
    %c0_i32_0 = arith.constant 0 : i32
    %c0_i32_1 = arith.constant 0 : i32
    return %arg0, %c0_i32, %c0_i32_0 : i32, i32, i32
  }
}

</mosaic_0001>

<bundles_post_ra>
// kernel: tpu_custom_call.1
= control target key start
LH: loop header
LB: loop body
LE: loop exit
PB: predicated region body
PF: predicated region fallthrough
CT: control target
= control target key end

     0   :  { %7 = vsyncpa [#allocation5], 0  ;;  %s749_s0 = inlined_call_operand.hbm [shape: f32[3], index: 0, kind: input, shape index: {}]   ;;  %s750_s1 = inlined_call_operand.hbm [shape: f32[2,4,256], index: 1, kind: input, shape index: {}]   ;;  %s751_s2 = inlined_call_operand.hbm [shape: f32[2,4,256], index: 2, kind: output, shape index: {}]  }
   0x1   :  { %8 = vsyncpa [#allocation3], 0 }
   0x2   :  { %10 = vsyncpa [#allocation3 + $0x1], 0 }
   0x3   :  { %11 = vsyncpa [#allocation4], 0 }
   0x4   :  { %13 = vsyncpa [#allocation4 + $0x1], 0  ;;  %s540_s9 = smov 0   ;;  %s542_s10 = smov 0  }
   0x5   :  { %s544_s11 = smov 0   ;;  %s546_s12 = smov 0  }
   0x6 LB: > { %s561_s13 = sadd.s32 4294967295, %s518_s12   ;;  %s320_s14 = sadd.s32 4294967294, %s518_s12   ;;  %s518_s12 = sphi %s546_s12, %s772_s12   ;;  %s514_s11 = sphi %s544_s11, %s771_s11   ;;  %s510_s10 = sphi %s542_s10, %s770_s10   ;;  %s506_s9 = sphi %s540_s9, %s769_s9  }
   0x7   : > { %p60_p0 = scmp.ne.s32.totalorder %s510_s10, %s506_s9  ;;  %p752_p1 = scmp.eq.s32.totalorder %s561_s13, 0 }
   0x8   : > { %p90_p3 = scmp.eq.s32.totalorder %s320_s14, 1  ;;  %p321_p5 = scmp.ge.s32.totalorder %s518_s12, 1 }
   0x9   : > { %p570_p4 = por %p752_p1, %p60_p0  ;;  %p97_p7 = scmp.lt.s32.totalorder %s518_s12, 3 }
   0xa   : > { %p575_p6 = por %p90_p3, %p60_p0  ;;  %s586_s18 = sadd.s32 1, %s518_s12  }
   0xb   : > { %s755_s15 = scalar_select %p570_p4, 1, 0 }
   0xc   : > { %s756_s16 = scalar_select %p575_p6, 1, 0 }
   0xd   : > { %p580_p8 = pnand %p321_p5, %p97_p7  ;;  %s44_s19 = ssub.s32 %s518_s12, %s586_s18 }
   0xe   : > { %s47_s20 = sadd.s32 1, %s514_s11  ;;  %p599_p12 = scmp.eq.s32.totalorder %s44_s19, 0 }
   0xf   : > { %p348_p10 = pneg %p580_p8  ;;  %p54_p13 = scmp.ne.s32.totalorder %s514_s11, %s510_s10 }
  0x10   : > { %p55_p0 = scmp.eq.s32.totalorder %s518_s12, 0  ;;  %p361_p3 = scmp.lt.s32.totalorder %s518_s12, 2 }
  0x11   : > { %p595_p11 = pnand %p348_p10, %p752_p1  ;;  %s405_s25 = scalar_lea.hbm %s749_s0, 16 }
  0x12   : > { %p406_p5 = scmp.ne.s32.totalorder %s749_s0, %s405_s25  ;;  %p412_p1 = scmp.lt.u32.totalorder %s405_s25, %s749_s0 }
  0x13   : > { %p407_p7 = pneg %p595_p11 }
  0x15   : > { %p408_p10 = pnand %p407_p7, %p406_p5 }
  0x17   : > { %p409_p9 = pneg %p408_p10 }
  0x19   : > { %p414_p2 = pnand %p412_p1, %p409_p9 }
  0x1b   : > { %417 = shalt.err (!%p414_p2)
}
  0x1c   : > { %s520_s30 = smov [#allocation2]   ;;  %p56_p1 = por %p55_p0, %p54_p13 }
  0x1d   : > { %351 = dma.hbm_to_smem (!%p595_p11), %s749_s0, 16, %s520_s30, [#allocation5]  }
  0x1e   : > { %s626_s5 = scalar_select %p599_p12, %s514_s11, %s47_s20  }
  0x1f   : > { %p760_p2 = scmp.eq.s32.totalorder %s561_s13, 1  ;;  %s119_s7 = sand.u32 1, %s514_s11  }
  0x20   : > { %s338_s8 = sshll.u32 %s518_s12, 7  ;;  %s324_s14 = sshll.u32 %s119_s7, 3 }
  0x21   : > { %p638_p9 = por %p760_p2, %p54_p13  ;;  %s647_s23 = scalar_lea.hbm %s750_s1, %s338_s8 }
  0x22   : > { %s123_s20 = scalar_lea.vmem [#allocation6], %s324_s14  ;;  %p651_p11 = pnand %p361_p3, %p56_p1 }
  0x23   : > { %s761_s6 = scalar_select %p638_p9, 1, 0 }
  0x24   : > { %s131_s22 = sshll.u32 %s123_s20, 4  ;;  %s120_s25 = scalar_lea.sflag [#allocation3], %s119_s7  ;;  %s655_s22 = int_to_ptr.vmem [resolvable:$true] %s131_s22 }
  0x25   : > { %s418_s26 = scalar_lea.hbm %s647_s23, 128  ;;  %p420_p13 = pneg %p651_p11 }
  0x26   : > { %p419_p12 = scmp.ne.s32.totalorder %s647_s23, %s418_s26  ;;  %s423_s29 = scalar_lea.hbm %s750_s1, 256 }
  0x27   : > { %p424_p3 = scmp.lt.u32.totalorder %s647_s23, %s750_s1  ;;  %p425_p7 = scmp.lt.u32.totalorder %s423_s29, %s418_s26 }
  0x28   : > { %p421_p0 = pnand %p420_p13, %p419_p12  ;;  %p427_p1 = scmp.lt.u32.totalorder %s418_s26, %s647_s23 }
  0x29   : > { %p426_p10 = por %p425_p7, %p424_p3 }
  0x2a   : > { %p422_p5 = pneg %p421_p0 }
  0x2b   : > { %p428_p2 = por %p427_p1, %p426_p10 }
  0x2d   : > { %p429_p6 = pnand %p428_p2, %p422_p5 }
  0x2f   : > { %432 = shalt.err (!%p429_p6)
}
  0x30   : > { %s433_s4 = scalar_lea.vmem %s655_s22, 128  ;;  %s521_s7 = smov [#allocation6]  }
  0x31   : > { %p434_p12 = scmp.ne.s32.totalorder %s655_s22, %s433_s4  ;;  %s438_s8 = sshll.u32 %s521_s7, 4  ;;  %s439_s8 = int_to_ptr.vmem [resolvable:$false] %s438_s8 }
  0x32   : > { %s440_s14 = scalar_lea.vmem %s439_s8, 256  ;;  %p441_p4 = scmp.lt.s32.totalorder %s655_s22, %s439_s8 }
  0x33   : > { %p436_p0 = pnand %p434_p12, %p420_p13  ;;  %p442_p3 = scmp.lt.s32.totalorder %s440_s14, %s433_s4 }
  0x35   : > { %p437_p9 = pneg %p436_p0  ;;  %p443_p7 = por %p442_p3, %p441_p4 }
  0x37   : > { %p444_p10 = pnand %p443_p7, %p437_p9 }
  0x39   : > { %447 = shalt.err (!%p444_p10)
}
  0x3a   : > { %355 = dma.hbm_to_vmem [thread:$0]  (!%p651_p11), %s647_s23, 128, %s655_s22, %s120_s25  }
  0x3b   : > { %140 = sbr.rel (%p580_p8) target bundleno = 406 (0x196), region = 28  ;;  %p763_p6 = scmp.eq.s32.totalorder (!%p580_p8), %s561_s13, 0 }
  0x42   : > { %493 = dma.done.wait (%p763_p6), [#allocation5], 16   ;;  %p764_p13 = pmov %p763_p6 }
  0x43   : > { %s689_s19 = sand.u32 1, %s510_s10   ;;  %p765_p4 = scmp.ne.s32.totalorder %s755_s15, 0 }
  0x44   : > { %495 = vsyncadd (%p764_p13), [#allocation5], 4294967280  ;;  %s329_s21 = sshll.u32 %s689_s19, 3  ;;  %s147_s20 = scalar_lea.sflag [#allocation3], %s689_s19 }
  0x45   : > { %s150_s23 = scalar_lea.vmem [#allocation6], %s329_s21 }
  0x46   : > { %497 = dma.done.wait (%p765_p4), %s147_s20, 128  }
  0x47   : > { %499 = vsyncadd (%p765_p4), %s147_s20, 4294967168 }
  0x48   : > { %155 = sfence }
  0x49   : > { %v172_v0 = vld [vmem:[%s150_s23] sm:$0xff]  ;;  %vm176_vm0 = vcmask 1043456   ;;  %v522_v5 = vmov 0   ;;  %s192_s17 = sld [smem:[#allocation2]]  ;;  %s331_s22 = sld [smem:[#allocation2 + $0x1]]  ;;  %vm186_vm1 = vcmask 1040384   ;;  %v216_v27 = vlaneseq }
  0x4a   : > { %v174_v1 = vcombine.high %v172_v0, %v172_v0  ;;  %v177_v2 = vsel %vm176_vm0, %v172_v0, 0.0  ;;  %399 = vset.pattern.permute.xlu0 %v522_v5  ;;  %s332_s24 = sld [smem:[#allocation2 + $0x2]]  ;;  %vm190_vm2 = vcmask 1042432   ;;  %v523_v25 = vmov 839922192   ;;  %s339_s15 = sshll.u32 %s561_s13, 7 }
  0x4b   : > { %v214_v26 = vunpack.c.l.s4 %v523_v25  ;;  %v217_v29 = vshrl.u32 %v216_v27, 7  ;;  %s171_s25 = scalar_lea.vmem [#allocation7], %s329_s21  ;;  %s705_s29 = scalar_lea.hbm %s751_s2, %s339_s15 }
  0x4c   : > { %v178_v3 = vsel %vm176_vm0, %v174_v1, 0.0  ;;  %s238_s26 = sshll.u32 %s171_s25, 4  ;;  %s224_s30 = scalar_lea.sflag [#allocation4], %s689_s19  ;;  %s707_s26 = int_to_ptr.vmem [resolvable:$true] %s238_s26 }
  0x4d   : > { %v179_v4 = vadd.f32 %v178_v3, %v177_v2  ;;  %v215_v28 = vunpack.c.0.s8 %v214_v26  ;;  %s448_s3 = scalar_lea.vmem %s707_s26, 128  ;;  %p766_p9 = scmp.ne.s32.totalorder %s761_s6, 0 }
  0x4e   : > { %p449_p8 = scmp.ne.s32.totalorder %s707_s26, %s448_s3  ;;  %s524_s13 = smov [#allocation7]  }
  0x4f   : > { %180 = vadd.xlane.f32.xlu0 %v179_v4  ;;  %v193_v8 = vstv %s192_s17  ;;  %v196_v9 = vstv %s331_s22  ;;  %v218_v30 = vsub.s32 %v215_v28, %v217_v29  ;;  %s452_s4 = sshll.u32 %s524_s13, 4  ;;  %s453_s4 = int_to_ptr.vmem [resolvable:$false] %s452_s4 }
  0x50   : > { %v200_v12 = vstv %s332_s24  ;;  %p450_p11 = pnand %p449_p8, %p766_p9  ;;  %s454_s7 = scalar_lea.vmem %s453_s4, 256 }
  0x51   : > { %p455_p1 = scmp.lt.s32.totalorder %s707_s26, %s453_s4  ;;  %p456_p2 = scmp.lt.s32.totalorder %s454_s7, %s448_s3 }
  0x52   : > { %p451_p5 = pneg %p450_p11 }
  0x53   : > { %p457_p12 = por %p456_p2, %p455_p1 }
  0x55   : > { %p458_p0 = pnand %p457_p12, %p451_p5 }
  0xdc   : > { %v181_v6 = vpop.xlane.xlu0 %180 }
  0xdd   : > { %v182_v7 = vmul.f32 0.00390625, %v181_v6 }
  0xdf   : > { %v184_v10 = vrot.slane %v182_v7, 7  ;;  %v188_v11 = vrot.slane %v182_v7, 1  ;;  %v197_v16 = vmul.f32 %v196_v9, %v182_v7 }
  0xe1   : > { %v187_v13 = vsel %vm186_vm1, 0.0, %v184_v10  ;;  %v191_v14 = vsel %vm190_vm2, %v188_v11, 0.0 }
  0xe2   : > { %v194_v15 = vmul.f32 %v193_v8, %v187_v13  ;;  %v201_v18 = vmul.f32 %v200_v12, %v191_v14 }
  0xe4   : > { %v198_v17 = vadd.f32 %v197_v16, %v194_v15 }
  0xe6   : > { %v202_v19 = vadd.f32 %v201_v18, %v198_v17 }
  0xe8   : > { %v203_v20 = vsub.f32 0.0, %v202_v19 }
  0xea   : > { %v204_v21 = vmul.f32 1.442695, %v203_v20 }
  0xec   : > { %401 = vpow2.f32 %v204_v21 }
  0xf6   : > { %v402_v22 = vpop.eup %401 }
  0xf7   : > { %v206_v23 = vadd.f32 1.0, %v402_v22 }
  0xf9   : > { %403 = vrcp.f32 %v206_v23 }
 0x103   : > { %v404_v24 = vpop.eup %403 }
 0x104   : > { %211 = vperm.xlu0 %399, %v404_v24  }
 0x183   : > { %v212_v31 = vpop.permute.xlu0 %211 }
 0x184   : > { %v219_v32 = vrot.slane %v212_v31, %v218_v30 }
 0x186   : > { %v221_v33 = vmul.f32 %v219_v32, %v172_v0 }
 0x188   : > { %222 = vst [vmem:[%s171_s25] sm:$0xff] %v221_v33 }
 0x189   : > { %461 = shalt.err (!%p458_p0)
}
 0x18a   : > { %s462_s8 = scalar_lea.hbm %s705_s29, 128  ;;  %s466_s21 = scalar_lea.hbm %s751_s2, 256 }
 0x18b   : > { %p463_p3 = scmp.ne.s32.totalorder %s705_s29, %s462_s8  ;;  %p467_p6 = scmp.lt.u32.totalorder %s705_s29, %s751_s2 }
 0x18c   : > { %p468_p13 = scmp.lt.u32.totalorder %s466_s21, %s462_s8  ;;  %p470_p8 = scmp.lt.u32.totalorder %s462_s8, %s705_s29 }
 0x18d   : > { %p464_p7 = pnand %p463_p3, %p766_p9 }
 0x18e   : > { %p469_p4 = por %p468_p13, %p467_p6 }
 0x18f   : > { %p465_p10 = pneg %p464_p7 }
 0x190   : > { %p471_p11 = por %p470_p8, %p469_p4 }
 0x192   : > { %p472_p5 = pnand %p471_p11, %p465_p10 }
 0x194   : > { %475 = shalt.err (!%p472_p5)
}
 0x195   : > { %346 = dma.vmem_to_hbm [thread:$0]  (%p766_p9), %s707_s26, 128, %s705_s29, %s224_s30  }
 0x196 PF: > { %s250_s17 = sand.u32 1, %s506_s9   ;;  %p767_p1 = scmp.ne.s32.totalorder %s756_s16, 0 }
 0x197   : > { %p768_p2 = scmp.ge.s32.totalorder %s518_s12, 2  ;;  %s251_s22 = scalar_lea.sflag [#allocation4], %s250_s17 }
 0x199   : > { %p357_p12 = pnand %p768_p2, %p767_p1 }
 0x19b   : > { %501 = dma.done.wait (!%p357_p12), %s251_s22, 128  }
 0x19c   : > { %503 = vsyncadd (!%p357_p12), %s251_s22, 4294967168  ;;  %p16_p0 = scmp.ge.s32.totalorder %s586_s18, 4   ;;  %s769_s9 = smov %s510_s10 }
 0x19d   : > { %s770_s10 = smov %s514_s11  ;;  %s771_s11 = smov %s626_s5 }
 0x19e   : > { %s772_s12 = smov %s586_s18  ;;  %18 = sbr.rel (!%p16_p0) target bundleno = 6 (0x6), region = 78 }
 0x1a5   :  { %256 = vsyncpa [#allocation3], 1 }
 0x1a6   :  { %258 = vsyncpa [#allocation3 + $0x1], 1 }
 0x1a7   :  { %259 = vsyncpa [#allocation4], 1 }
 0x1a8   :  { %261 = vsyncpa [#allocation4 + $0x1], 1 }
 0x1a9   :  { %262 = vsyncpa [#allocation5], 1 }
 0x1aa   :  { %264 = vsyncpa [#allocation5 + $0x1], 1 }

</bundles_post_ra>
